<compile_context>
chip_gen: v7x
topology: tpu7x:2x2x1
jax: 0.10.0
libtpu: 0.0.40
codegen_flags: <defaults>
</compile_context>

<pallas_src>
import functools

import jax
import jax.numpy as jnp
from jax import lax
from jax.experimental import pallas as pl
from jax.experimental.pallas import tpu as pltpu

_LANE = 128


def _complex_matmul_kernel(sig_ref, ker_ref, out_ref, *, chunks, cin_g, unroll):
    """One grid step: contract Cin_g for one (group, freq-tile, batch) block.

    sig_ref : (2, 1, 1, Cin_g, f_tile)       re/im stacked on axis 0
    ker_ref : (2, 1, Cin_g, Cout_g, f_tile)
    out_ref : (2, 1, 1, Cout_g, f_tile)

    The reference conjugates the kernel (kernel_fr.imag *= -1); folded in:
        real = sr*kr + si*ki ,  imag = si*kr - sr*ki   (summed over Cin_g)
    """
    cout_g = ker_ref.shape[3]

    # Static frequency-chunk loop: keeps the live accumulators small enough to
    # stay in vregs (no VMEM spills).  Each chunk is written out when done.
    for off, sz in chunks:
        fsl = pl.ds(off, sz)

        def body(ci, carry, fsl=fsl, sz=sz):
            acc_r, acc_i = carry
            # Materialize the sublane-broadcast signal row once per (ci, chunk)
            # and reuse it for both the real and imag terms.
            sr = jnp.broadcast_to(sig_ref[0, 0, 0, pl.ds(ci, 1), fsl],
                                  (cout_g, sz))
            si = jnp.broadcast_to(sig_ref[1, 0, 0, pl.ds(ci, 1), fsl],
                                  (cout_g, sz))
            kr = ker_ref[0, 0, ci, :, fsl]           # (Cout_g, sz) contiguous
            ki = ker_ref[1, 0, ci, :, fsl]
            acc_r = acc_r + (sr * kr + si * ki)      # f32 accumulation
            acc_i = acc_i + (si * kr - sr * ki)
            return acc_r, acc_i

        init = (jnp.zeros((cout_g, sz), jnp.float32),
                jnp.zeros((cout_g, sz), jnp.float32))
        if cin_g <= 8:
            # Small reduction: fully static unroll (bounded live set thanks to
            # the chunking above).
            acc_r, acc_i = init
            for ci in range(cin_g):
                acc_r, acc_i = body(ci, (acc_r, acc_i))
        else:
            # Large reduction: small-unroll fori_loop carrying in-vreg accs.
            acc_r, acc_i = lax.fori_loop(0, cin_g, body, init, unroll=unroll)

        out_ref[0, 0, 0, :, fsl] = acc_r
        out_ref[1, 0, 0, :, fsl] = acc_i


def _vmem_capacity_bytes():
    try:
        return int(pltpu.get_tpu_info().vmem_capacity_bytes)
    except Exception:
        return 64 * 1024 * 1024            # conservative: v7x per-core VMEM


def complex_matmul_pallas(sig_re, sig_im, ker_re, ker_im, groups,
                          operand_dtype=jnp.float32):
    """Grouped complex channel contraction over flattened frequency bins."""
    B, Cin, H, Wf = sig_re.shape
    Cout, Cin_g = ker_re.shape[0], ker_re.shape[1]
    assert Cin == groups * Cin_g
    Cout_g = Cout // groups
    F = H * Wf

    op_bytes = jnp.dtype(operand_dtype).itemsize

    # ---- tile sizing ------------------------------------------------------
    # In-kernel compute chunk: Cout_g * chunk <= 4096 elements keeps the two
    # f32 accumulators (plus operand chunks) comfortably inside the vreg file.
    f_chunk = min(512, max(_LANE, (4096 // max(Cout_g, 1)) // _LANE * _LANE))

    # Generation-aware VMEM budget (v7x: 64 MiB/TC -> ~40 MiB limit;
    # v5e/v6e: 128 MiB -> ~80 MiB), minus headroom for internal scratch.
    vmem_cap = _vmem_capacity_bytes()
    vmem_soft_cap = vmem_cap * 5 // 8
    budget = max(8 * 1024 * 1024, vmem_soft_cap - 8 * 1024 * 1024)

    # Bytes per frequency lane across all (double-buffered, re+im) streams.
    per_f = 2 * 2 * (op_bytes * (Cin_g + Cin_g * Cout_g) + 4 * Cout_g)

    if F <= f_chunk:
        f_tile = F                         # single ragged tile == full F axis
    else:
        by_budget = max(f_chunk, (budget // per_f) // f_chunk * f_chunk)
        f_tile = int(min(by_budget, 4096, (F // f_chunk) * f_chunk))
    n_ft = pl.cdiv(F, f_tile)

    # v7x has 2 TensorCores: ensure the grid exposes >= 2 steps to shard.
    if groups * B * n_ft == 1 and F >= 2 * _LANE:
        f_tile = pl.cdiv(pl.cdiv(F, 2), _LANE) * _LANE
        n_ft = pl.cdiv(F, f_tile)

    chunks = []
    off = 0
    while off < f_tile:
        sz = min(f_chunk, f_tile - off)
        chunks.append((off, sz))
        off += sz
    chunks = tuple(chunks)

    # ---- operand prep (NO frequency padding: Pallas handles the ragged last
    # tile; OOB lanes stay element-wise and their writes are dropped). -------
    sig = jnp.stack([sig_re.reshape(B, groups, Cin_g, F),
                     sig_im.reshape(B, groups, Cin_g, F)], axis=0)
    ker = jnp.transpose(
        jnp.stack([ker_re.reshape(groups, Cout_g, Cin_g, F),
                   ker_im.reshape(groups, Cout_g, Cin_g, F)], axis=0),
        (0, 1, 3, 2, 4))                   # (2, G, Cin_g, Cout_g, F)
    sig = sig.astype(operand_dtype)
    ker = ker.astype(operand_dtype)

    # Grid: (groups, freq-tiles, batch).  Batch innermost -> the kernel-weight
    # block index is constant across B -> weights stay VMEM resident (no
    # re-DMA across the batch).
    sig_spec = pl.BlockSpec((2, 1, 1, Cin_g, f_tile),
                            lambda g, ft, b: (0, b, g, 0, ft))
    ker_spec = pl.BlockSpec((2, 1, Cin_g, Cout_g, f_tile),
                            lambda g, ft, b: (0, g, 0, 0, ft))
    out_spec = pl.BlockSpec((2, 1, 1, Cout_g, f_tile),
                            lambda g, ft, b: (0, b, g, 0, ft))
    # TODO(synk): pipeline_mode=pl.Buffered(1) on ker_spec (weights only change
    # every B steps) would halve the dominant VMEM term; left at default
    # double-buffering for lowering safety.

    buf_bytes = per_f * f_tile
    vmem_limit = int(min(vmem_soft_cap,
                         max(32 * 1024 * 1024, buf_bytes + 8 * 1024 * 1024)))

    kernel = functools.partial(_complex_matmul_kernel, chunks=chunks,
                               cin_g=Cin_g, unroll=4)

    out = pl.pallas_call(
        kernel,
        out_shape=jax.ShapeDtypeStruct((2, B, groups, Cout_g, F), jnp.float32),
        grid_spec=pltpu.PrefetchScalarGridSpec(
            num_scalar_prefetch=0,
            grid=(groups, n_ft, B),
            in_specs=[sig_spec, ker_spec],
            out_specs=out_spec,
        ),
        compiler_params=pltpu.CompilerParams(
            dimension_semantics=("parallel", "parallel", "parallel"),
            vmem_limit_bytes=vmem_limit),
    )(sig, ker)

    out_re = out[0].reshape(B, Cout, H, Wf)
    out_im = out[1].reshape(B, Cout, H, Wf)
    return out_re, out_im


def _to_ntuple(val, n):
    if isinstance(val, (tuple, list)):
        assert len(val) == n
        return tuple(val)
    return (val,) * n


def fft_conv2d(signal, kernel, bias=None, padding=0, stride=1, groups=1,
               operand_dtype=jnp.float32):
    """signal: (B, Cin, H, W);  kernel: (Cout, Cin//groups, kH, kW)."""
    padding_ = _to_ntuple(padding, 2)
    stride_ = _to_ntuple(stride, 2)

    signal = jnp.pad(signal, ((0, 0), (0, 0),
                              (padding_[0], padding_[0]),
                              (padding_[1], padding_[1])))
    # Pad last dim to even length for rfft (as in the PyTorch reference).
    extra = signal.shape[-1] % 2
    signal_ = jnp.pad(signal, ((0, 0), (0, 0), (0, 0), (0, extra)))

    Hs, Ws = signal_.shape[-2:]
    kH, kW = kernel.shape[-2:]
    padded_kernel = jnp.pad(kernel, ((0, 0), (0, 0), (0, Hs - kH), (0, Ws - kW)))

    # TODO(synk): rfftn/irfftn have no Pallas TPU primitive; they stay as XLA
    # FFT ops.  For a conv *layer* (weights reused across calls) the kernel
    # rfft + (G, Cin_g, Cout_g, F) transpose should be precomputed and cached,
    # and for small spatial kernels a direct lax.conv (MXU path) is faster.
    signal_fr = jnp.fft.rfftn(signal_, axes=(2, 3))
    kernel_fr = jnp.fft.rfftn(padded_kernel, axes=(2, 3))

    out_re, out_im = complex_matmul_pallas(
        jnp.real(signal_fr).astype(jnp.float32),
        jnp.imag(signal_fr).astype(jnp.float32),
        jnp.real(kernel_fr).astype(jnp.float32),
        jnp.imag(kernel_fr).astype(jnp.float32),
        groups, operand_dtype=operand_dtype)

    output = jnp.fft.irfftn(out_re + 1j * out_im, axes=(2, 3))

    # Crop to the valid correlation extent with stride (matches the reference).
    H_valid = signal.shape[2] - kH + 1
    W_valid = signal.shape[3] - kW + 1
    output = output[:, :, 0:H_valid:stride_[0], 0:W_valid:stride_[1]]

    if bias is not None:
        output = output + bias.reshape(1, -1, 1, 1)
    return output.astype(jnp.float32)


if __name__ == "__main__":
    key = jax.random.PRNGKey(0)
    k1, k2, k3, k4, k5 = jax.random.split(key, 5)

    # Test 1: dense conv, padding=1, stride=1.
    B, Cin, H, W = 2, 4, 16, 16
    Cout, kH, kW = 8, 3, 3
    x = jax.random.normal(k1, (B, Cin, H, W), dtype=jnp.float32)
    w = jax.random.normal(k2, (Cout, Cin, kH, kW), dtype=jnp.float32)
    b = jax.random.normal(k3, (Cout,), dtype=jnp.float32)

    out = fft_conv2d(x, w, bias=b, padding=1, stride=1, groups=1)
    out = jax.block_until_ready(out)

    ref = jax.lax.conv_general_dilated(
        x, w, window_strides=(1, 1), padding=((1, 1), (1, 1)),
        dimension_numbers=("NCHW", "OIHW", "NCHW"))
    ref = ref + b.reshape(1, -1, 1, 1)
    assert out.shape == ref.shape == (B, Cout, H, W)
    assert jnp.allclose(out, ref, atol=1e-2, rtol=1e-2)

    # Test 2: grouped conv, odd width, padding=2, stride=2.
    B2, Cin2, H2, W2, Cout2, g2 = 2, 4, 16, 15, 6, 2
    x2 = jax.random.normal(k4, (B2, Cin2, H2, W2), dtype=jnp.float32)
    w2 = jax.random.normal(k5, (Cout2, Cin2 // g2, kH, kW), dtype=jnp.float32)

    out2 = fft_conv2d(x2, w2, bias=None, padding=2, stride=2, groups=g2)
    out2 = jax.block_until_ready(out2)

    ref2 = jax.lax.conv_general_dilated(
        x2, w2, window_strides=(2, 2), padding=((2, 2), (2, 2)),
        dimension_numbers=("NCHW", "OIHW", "NCHW"), feature_group_count=g2)
    assert out2.shape == ref2.shape
    assert jnp.allclose(out2, ref2, atol=1e-2, rtol=1e-2)

    print("KERNEL_OK")
</pallas_src>

<mosaic_0001>
module attributes {stable_mosaic.version = 11 : i64} {
  func.func @_complex_matmul_kernel(%arg0: i32, %arg1: i32, %arg2: i32, %arg3: memref<2x1x1x4x180xf32, #tpu.memory_space<vmem>>, %arg4: memref<2x1x4x8x180xf32, #tpu.memory_space<vmem>>, %arg5: memref<2x1x1x8x180xf32, #tpu.memory_space<vmem>>) attributes {dimension_semantics = [#tpu.dimension_semantics<parallel>, #tpu.dimension_semantics<parallel>, #tpu.dimension_semantics<parallel>], iteration_bounds = array<i64: 1, 1, 2>, scalar_prefetch = 0 : i64, scratch_operands = 0 : i64, tpu.core_type = #tpu.core_type<tc>, window_params = [{transform_indices = @transform_0, window_bounds = array<i64: 2, 1, 1, 4, 180>}, {transform_indices = @transform_1, window_bounds = array<i64: 2, 1, 4, 8, 180>}, {transform_indices = @transform_2, window_bounds = array<i64: 2, 1, 1, 8, 180>}]} {
    %cst = arith.constant 0.000000e+00 : f32
    %0 = vector.broadcast %cst : f32 to vector<8x180xf32>
    %cst_0 = arith.constant 0.000000e+00 : f32
    %1 = vector.broadcast %cst_0 : f32 to vector<8x180xf32>
    %c0 = arith.constant 0 : index
    %c0_1 = arith.constant 0 : index
    %c0_2 = arith.constant 0 : index
    %c0_3 = arith.constant 0 : index
    %c0_4 = arith.constant 0 : index
    %2 = vector.load %arg3[%c0, %c0_1, %c0_2, %c0_3, %c0_4] : memref<2x1x1x4x180xf32, #tpu.memory_space<vmem>>, vector<1x1x1x1x180xf32>
    %3 = vector.shape_cast %2 : vector<1x1x1x1x180xf32> to vector<1x180xf32>
    %4 = vector.shape_cast %3 : vector<1x180xf32> to vector<1x180xf32>
    %5 = vector.broadcast %4 : vector<1x180xf32> to vector<8x180xf32>
    %c1 = arith.constant 1 : index
    %c0_5 = arith.constant 0 : index
    %c0_6 = arith.constant 0 : index
    %c0_7 = arith.constant 0 : index
    %c0_8 = arith.constant 0 : index
    %6 = vector.load %arg3[%c1, %c0_5, %c0_6, %c0_7, %c0_8] : memref<2x1x1x4x180xf32, #tpu.memory_space<vmem>>, vector<1x1x1x1x180xf32>
    %7 = vector.shape_cast %6 : vector<1x1x1x1x180xf32> to vector<1x180xf32>
    %8 = vector.shape_cast %7 : vector<1x180xf32> to vector<1x180xf32>
    %9 = vector.broadcast %8 : vector<1x180xf32> to vector<8x180xf32>
    %c0_9 = arith.constant 0 : index
    %c0_10 = arith.constant 0 : index
    %c0_11 = arith.constant 0 : index
    %c0_12 = arith.constant 0 : index
    %c0_13 = arith.constant 0 : index
    %10 = vector.load %arg4[%c0_9, %c0_10, %c0_11, %c0_12, %c0_13] : memref<2x1x4x8x180xf32, #tpu.memory_space<vmem>>, vector<1x1x1x8x180xf32>
    %11 = vector.shape_cast %10 : vector<1x1x1x8x180xf32> to vector<8x180xf32>
    %c1_14 = arith.constant 1 : index
    %c0_15 = arith.constant 0 : index
    %c0_16 = arith.constant 0 : index
    %c0_17 = arith.constant 0 : index
    %c0_18 = arith.constant 0 : index
    %12 = vector.load %arg4[%c1_14, %c0_15, %c0_16, %c0_17, %c0_18] : memref<2x1x4x8x180xf32, #tpu.memory_space<vmem>>, vector<1x1x1x8x180xf32>
    %13 = vector.shape_cast %12 : vector<1x1x1x8x180xf32> to vector<8x180xf32>
    %14 = arith.mulf %5, %11 : vector<8x180xf32>
    %15 = arith.mulf %9, %13 : vector<8x180xf32>
    %16 = arith.addf %14, %15 : vector<8x180xf32>
    %17 = arith.addf %0, %16 : vector<8x180xf32>
    %18 = arith.mulf %9, %11 : vector<8x180xf32>
    %19 = arith.mulf %5, %13 : vector<8x180xf32>
    %20 = arith.subf %18, %19 : vector<8x180xf32>
    %21 = arith.addf %1, %20 : vector<8x180xf32>
    %c0_19 = arith.constant 0 : index
    %c0_20 = arith.constant 0 : index
    %c0_21 = arith.constant 0 : index
    %c1_22 = arith.constant 1 : index
    %c0_23 = arith.constant 0 : index
    %22 = vector.load %arg3[%c0_19, %c0_20, %c0_21, %c1_22, %c0_23] : memref<2x1x1x4x180xf32, #tpu.memory_space<vmem>>, vector<1x1x1x1x180xf32>
    %23 = vector.shape_cast %22 : vector<1x1x1x1x180xf32> to vector<1x180xf32>
    %24 = vector.shape_cast %23 : vector<1x180xf32> to vector<1x180xf32>
    %25 = vector.broadcast %24 : vector<1x180xf32> to vector<8x180xf32>
    %c1_24 = arith.constant 1 : index
    %c0_25 = arith.constant 0 : index
    %c0_26 = arith.constant 0 : index
    %c1_27 = arith.constant 1 : index
    %c0_28 = arith.constant 0 : index
    %26 = vector.load %arg3[%c1_24, %c0_25, %c0_26, %c1_27, %c0_28] : memref<2x1x1x4x180xf32, #tpu.memory_space<vmem>>, vector<1x1x1x1x180xf32>
    %27 = vector.shape_cast %26 : vector<1x1x1x1x180xf32> to vector<1x180xf32>
    %28 = vector.shape_cast %27 : vector<1x180xf32> to vector<1x180xf32>
    %29 = vector.broadcast %28 : vector<1x180xf32> to vector<8x180xf32>
    %c0_29 = arith.constant 0 : index
    %c0_30 = arith.constant 0 : index
    %c1_31 = arith.constant 1 : index
    %c0_32 = arith.constant 0 : index
    %c0_33 = arith.constant 0 : index
    %30 = vector.load %arg4[%c0_29, %c0_30, %c1_31, %c0_32, %c0_33] : memref<2x1x4x8x180xf32, #tpu.memory_space<vmem>>, vector<1x1x1x8x180xf32>
    %31 = vector.shape_cast %30 : vector<1x1x1x8x180xf32> to vector<8x180xf32>
    %c1_34 = arith.constant 1 : index
    %c0_35 = arith.constant 0 : index
    %c1_36 = arith.constant 1 : index
    %c0_37 = arith.constant 0 : index
    %c0_38 = arith.constant 0 : index
    %32 = vector.load %arg4[%c1_34, %c0_35, %c1_36, %c0_37, %c0_38] : memref<2x1x4x8x180xf32, #tpu.memory_space<vmem>>, vector<1x1x1x8x180xf32>
    %33 = vector.shape_cast %32 : vector<1x1x1x8x180xf32> to vector<8x180xf32>
    %34 = arith.mulf %25, %31 : vector<8x180xf32>
    %35 = arith.mulf %29, %33 : vector<8x180xf32>
    %36 = arith.addf %34, %35 : vector<8x180xf32>
    %37 = arith.addf %17, %36 : vector<8x180xf32>
    %38 = arith.mulf %29, %31 : vector<8x180xf32>
    %39 = arith.mulf %25, %33 : vector<8x180xf32>
    %40 = arith.subf %38, %39 : vector<8x180xf32>
    %41 = arith.addf %21, %40 : vector<8x180xf32>
    %c0_39 = arith.constant 0 : index
    %c0_40 = arith.constant 0 : index
    %c0_41 = arith.constant 0 : index
    %c2 = arith.constant 2 : index
    %c0_42 = arith.constant 0 : index
    %42 = vector.load %arg3[%c0_39, %c0_40, %c0_41, %c2, %c0_42] : memref<2x1x1x4x180xf32, #tpu.memory_space<vmem>>, vector<1x1x1x1x180xf32>
    %43 = vector.shape_cast %42 : vector<1x1x1x1x180xf32> to vector<1x180xf32>
    %44 = vector.shape_cast %43 : vector<1x180xf32> to vector<1x180xf32>
    %45 = vector.broadcast %44 : vector<1x180xf32> to vector<8x180xf32>
    %c1_43 = arith.constant 1 : index
    %c0_44 = arith.constant 0 : index
    %c0_45 = arith.constant 0 : index
    %c2_46 = arith.constant 2 : index
    %c0_47 = arith.constant 0 : index
    %46 = vector.load %arg3[%c1_43, %c0_44, %c0_45, %c2_46, %c0_47] : memref<2x1x1x4x180xf32, #tpu.memory_space<vmem>>, vector<1x1x1x1x180xf32>
    %47 = vector.shape_cast %46 : vector<1x1x1x1x180xf32> to vector<1x180xf32>
    %48 = vector.shape_cast %47 : vector<1x180xf32> to vector<1x180xf32>
    %49 = vector.broadcast %48 : vector<1x180xf32> to vector<8x180xf32>
    %c0_48 = arith.constant 0 : index
    %c0_49 = arith.constant 0 : index
    %c2_50 = arith.constant 2 : index
    %c0_51 = arith.constant 0 : index
    %c0_52 = arith.constant 0 : index
    %50 = vector.load %arg4[%c0_48, %c0_49, %c2_50, %c0_51, %c0_52] : memref<2x1x4x8x180xf32, #tpu.memory_space<vmem>>, vector<1x1x1x8x180xf32>
    %51 = vector.shape_cast %50 : vector<1x1x1x8x180xf32> to vector<8x180xf32>
    %c1_53 = arith.constant 1 : index
    %c0_54 = arith.constant 0 : index
    %c2_55 = arith.constant 2 : index
    %c0_56 = arith.constant 0 : index
    %c0_57 = arith.constant 0 : index
    %52 = vector.load %arg4[%c1_53, %c0_54, %c2_55, %c0_56, %c0_57] : memref<2x1x4x8x180xf32, #tpu.memory_space<vmem>>, vector<1x1x1x8x180xf32>
    %53 = vector.shape_cast %52 : vector<1x1x1x8x180xf32> to vector<8x180xf32>
    %54 = arith.mulf %45, %51 : vector<8x180xf32>
    %55 = arith.mulf %49, %53 : vector<8x180xf32>
    %56 = arith.addf %54, %55 : vector<8x180xf32>
    %57 = arith.addf %37, %56 : vector<8x180xf32>
    %58 = arith.mulf %49, %51 : vector<8x180xf32>
    %59 = arith.mulf %45, %53 : vector<8x180xf32>
    %60 = arith.subf %58, %59 : vector<8x180xf32>
    %61 = arith.addf %41, %60 : vector<8x180xf32>
    %c0_58 = arith.constant 0 : index
    %c0_59 = arith.constant 0 : index
    %c0_60 = arith.constant 0 : index
    %c3 = arith.constant 3 : index
    %c0_61 = arith.constant 0 : index
    %62 = vector.load %arg3[%c0_58, %c0_59, %c0_60, %c3, %c0_61] : memref<2x1x1x4x180xf32, #tpu.memory_space<vmem>>, vector<1x1x1x1x180xf32>
    %63 = vector.shape_cast %62 : vector<1x1x1x1x180xf32> to vector<1x180xf32>
    %64 = vector.shape_cast %63 : vector<1x180xf32> to vector<1x180xf32>
    %65 = vector.broadcast %64 : vector<1x180xf32> to vector<8x180xf32>
    %c1_62 = arith.constant 1 : index
    %c0_63 = arith.constant 0 : index
    %c0_64 = arith.constant 0 : index
    %c3_65 = arith.constant 3 : index
    %c0_66 = arith.constant 0 : index
    %66 = vector.load %arg3[%c1_62, %c0_63, %c0_64, %c3_65, %c0_66] : memref<2x1x1x4x180xf32, #tpu.memory_space<vmem>>, vector<1x1x1x1x180xf32>
    %67 = vector.shape_cast %66 : vector<1x1x1x1x180xf32> to vector<1x180xf32>
    %68 = vector.shape_cast %67 : vector<1x180xf32> to vector<1x180xf32>
    %69 = vector.broadcast %68 : vector<1x180xf32> to vector<8x180xf32>
    %c0_67 = arith.constant 0 : index
    %c0_68 = arith.constant 0 : index
    %c3_69 = arith.constant 3 : index
    %c0_70 = arith.constant 0 : index
    %c0_71 = arith.constant 0 : index
    %70 = vector.load %arg4[%c0_67, %c0_68, %c3_69, %c0_70, %c0_71] : memref<2x1x4x8x180xf32, #tpu.memory_space<vmem>>, vector<1x1x1x8x180xf32>
    %71 = vector.shape_cast %70 : vector<1x1x1x8x180xf32> to vector<8x180xf32>
    %c1_72 = arith.constant 1 : index
    %c0_73 = arith.constant 0 : index
    %c3_74 = arith.constant 3 : index
    %c0_75 = arith.constant 0 : index
    %c0_76 = arith.constant 0 : index
    %72 = vector.load %arg4[%c1_72, %c0_73, %c3_74, %c0_75, %c0_76] : memref<2x1x4x8x180xf32, #tpu.memory_space<vmem>>, vector<1x1x1x8x180xf32>
    %73 = vector.shape_cast %72 : vector<1x1x1x8x180xf32> to vector<8x180xf32>
    %74 = arith.mulf %65, %71 : vector<8x180xf32>
    %75 = arith.mulf %69, %73 : vector<8x180xf32>
    %76 = arith.addf %74, %75 : vector<8x180xf32>
    %77 = arith.addf %57, %76 : vector<8x180xf32>
    %78 = arith.mulf %69, %71 : vector<8x180xf32>
    %79 = arith.mulf %65, %73 : vector<8x180xf32>
    %80 = arith.subf %78, %79 : vector<8x180xf32>
    %81 = arith.addf %61, %80 : vector<8x180xf32>
    %c0_77 = arith.constant 0 : index
    %c0_78 = arith.constant 0 : index
    %c0_79 = arith.constant 0 : index
    %c0_80 = arith.constant 0 : index
    %c0_81 = arith.constant 0 : index
    %82 = vector.load %arg5[%c0_77, %c0_78, %c0_79, %c0_80, %c0_81] : memref<2x1x1x8x180xf32, #tpu.memory_space<vmem>>, vector<1x1x1x8x180xf32>
    %83 = vector.shape_cast %82 : vector<1x1x1x8x180xf32> to vector<8x180xf32>
    %84 = vector.shape_cast %77 : vector<8x180xf32> to vector<1x1x1x8x180xf32>
    tpu.vector_store %arg5[%c0_77, %c0_78, %c0_79, %c0_80, %c0_81], %84 {strides = array<i32>} : memref<2x1x1x8x180xf32, #tpu.memory_space<vmem>>, vector<1x1x1x8x180xf32>,
    %c1_82 = arith.constant 1 : index
    %c0_83 = arith.constant 0 : index
    %c0_84 = arith.constant 0 : index
    %c0_85 = arith.constant 0 : index
    %c0_86 = arith.constant 0 : index
    %85 = vector.load %arg5[%c1_82, %c0_83, %c0_84, %c0_85, %c0_86] : memref<2x1x1x8x180xf32, #tpu.memory_space<vmem>>, vector<1x1x1x8x180xf32>
    %86 = vector.shape_cast %85 : vector<1x1x1x8x180xf32> to vector<8x180xf32>
    %87 = vector.shape_cast %81 : vector<8x180xf32> to vector<1x1x1x8x180xf32>
    tpu.vector_store %arg5[%c1_82, %c0_83, %c0_84, %c0_85, %c0_86], %87 {strides = array<i32>} : memref<2x1x1x8x180xf32, #tpu.memory_space<vmem>>, vector<1x1x1x8x180xf32>,
    return
  }
  func.func @transform_0(%arg0: i32, %arg1: i32, %arg2: i32) -> (i32, i32, i32, i32, i32) {
    %c0_i32 = arith.constant 0 : i32
    %c0_i32_0 = arith.constant 0 : i32
    %c0_i32_1 = arith.constant 0 : i32
    return %c0_i32, %arg2, %arg0, %c0_i32_0, %arg1 : i32, i32, i32, i32, i32
  }
  func.func @transform_1(%arg0: i32, %arg1: i32, %arg2: i32) -> (i32, i32, i32, i32, i32) {
    %c0_i32 = arith.constant 0 : i32
    %c0_i32_0 = arith.constant 0 : i32
    %c0_i32_1 = arith.constant 0 : i32
    %c0_i32_2 = arith.constant 0 : i32
    return %c0_i32, %arg0, %c0_i32_0, %c0_i32_1, %arg1 : i32, i32, i32, i32, i32
  }
  func.func @transform_2(%arg0: i32, %arg1: i32, %arg2: i32) -> (i32, i32, i32, i32, i32) {
    %c0_i32 = arith.constant 0 : i32
    %c0_i32_0 = arith.constant 0 : i32
    %c0_i32_1 = arith.constant 0 : i32
    return %c0_i32, %arg2, %arg0, %c0_i32_0, %arg1 : i32, i32, i32, i32, i32
  }
}

</mosaic_0001>

<bundles_post_ra>
// kernel: tpu_custom_call.1
= control target key start
LH: loop header
LB: loop body
LE: loop exit
PB: predicated region body
PF: predicated region fallthrough
CT: control target
= control target key end

     0   :  { %7 = vsyncpa [#allocation3], 0  ;;  %s1104_s0 = inlined_call_operand.hbm [shape: f32[2,2,1,4,180], index: 0, kind: input, shape index: {}]   ;;  %s1105_s1 = inlined_call_operand.hbm [shape: f32[2,1,4,8,180], index: 1, kind: input, shape index: {}]   ;;  %s1106_s2 = inlined_call_operand.hbm [shape: f32[2,2,1,8,180], index: 2, kind: output, shape index: {}]  }
   0x1   :  { %9 = vsyncpa [#allocation3 + $0x1], 0 }
   0x2   :  { %10 = vsyncpa [#allocation6], 0 }
   0x3   :  { %11 = vsyncpa [#allocation4], 0 }
   0x4   :  { %13 = vsyncpa [#allocation4 + $0x1], 0  ;;  %s828_s9 = smov 0   ;;  %s830_s10 = smov 0  }
   0x5   :  { %s832_s11 = smov 0   ;;  %s834_s12 = smov 0  }
   0x6   :  { %s836_s13 = smov 0   ;;  %s838_s14 = smov 0  }
   0x7 LB: > { %s549_s15 = sadd.s32 4294967295, %s801_s14   ;;  %s550_s16 = sadd.s32 4294967294, %s801_s14   ;;  %s801_s14 = sphi %s838_s14, %s19_s14   ;;  %s797_s13 = sphi %s836_s13, %s1132_s13   ;;  %s793_s12 = sphi %s834_s12, %s1131_s12   ;;  %s789_s11 = sphi %s832_s11, %s1130_s11   ;;  %s785_s10 = sphi %s830_s10, %s1129_s10   ;;  %s781_s9 = sphi %s828_s9, %s1128_s9  }
   0x8   : > { %p56_p0 = scmp.ne.s32.totalorder %s789_s11, %s785_s10  ;;  %p57_p1 = scmp.eq.s32.totalorder %s801_s14, 0 }
   0x9   : > { %p62_p2 = scmp.ne.s32.totalorder %s785_s10, %s781_s9  ;;  %p865_p3 = scmp.eq.s32.totalorder %s549_s15, 0 }
   0xa   : > { %p869_p4 = por %p57_p1, %p56_p0  ;;  %p118_p5 = scmp.eq.s32.totalorder %s549_s15, 1 }
   0xb   : > { %s1113_s17 = scalar_select %p865_p3, 1, 0 }
   0xc   : > { %p875_p6 = por %p865_p3, %p62_p2  ;;  %p124_p7 = scmp.eq.s32.totalorder %s550_s16, 1 }
   0xd   : > { %p879_p8 = por %p118_p5, %p56_p0  ;;  %p551_p9 = scmp.ge.s32.totalorder %s801_s14, 1 }
   0xe   : > { %s1115_s19 = scalar_select %p875_p6, 1, 0 }
   0xf   : > { %s1116_s20 = scalar_select %p879_p8, 1, 0 }
  0x10   : > { %p884_p10 = por %p124_p7, %p62_p2  ;;  %p131_p11 = scmp.lt.s32.totalorder %s801_s14, 3 }
  0x11   : > { %s803_s23 = smov [#allocation5]   ;;  %p598_p1 = scmp.lt.s32.totalorder %s801_s14, 2 }
  0x12   : > { %s1117_s21 = scalar_select %p884_p10, 1, 0 }
  0x13   : > { %p889_p12 = pnand %p551_p9, %p131_p11  ;;  %s148_s24 = sshll.u32 %s803_s23, 4  ;;  %s893_s24 = int_to_ptr.vmem [resolvable:$true] %s148_s24 }
  0x14   : > { %p907_p2 = pnand %p598_p1, %p869_p4  ;;  %s31_s27 = sadd.s32 1, %s797_s13 }
  0x15   : > { %s1118_s22 = scalar_select %p889_p12, 1, 0 }
  0x16   : > { %p585_p13 = pneg %p889_p12  ;;  %s657_s30 = scalar_lea.hbm %s1105_s1, 2048 }
  0x17   : > { %s1120_s26 = scalar_select %p907_p2, 1, 0 }
  0x18   : > { %p901_p5 = pnand %p585_p13, %p865_p3  ;;  %p658_p7 = scmp.ne.s32.totalorder %s1105_s1, %s657_s30 }
  0x19   : > { %p664_p4 = scmp.lt.u32.totalorder %s657_s30, %s1105_s1 }
  0x1a   : > { %p659_p9 = pneg %p901_p5 }
  0x1c   : > { %p660_p11 = pnand %p659_p9, %p658_p7 }
  0x1e   : > { %p661_p13 = pneg %p660_p11 }
  0x20   : > { %p666_p1 = pnand %p664_p4, %p661_p13 }
  0x22   : > { %669 = shalt.err (!%p666_p1)
}
  0x23   : > { %s670_s7 = scalar_lea.vmem %s893_s24, 2048  ;;  %p678_p3 = scmp.lt.s32.totalorder %s893_s24, %s893_s24 }
  0x24   : > { %p671_p0 = scmp.ne.s32.totalorder %s893_s24, %s670_s7  ;;  %p679_p6 = scmp.lt.s32.totalorder %s670_s7, %s670_s7 }
  0x26   : > { %p673_p10 = pnand %p671_p0, %p659_p9  ;;  %p680_p12 = por %p679_p6, %p678_p3 }
  0x28   : > { %p674_p8 = pneg %p673_p10 }
  0x2a   : > { %p681_p2 = pnand %p680_p12, %p674_p8 }
  0x2c   : > { %684 = shalt.err (!%p681_p2)
}
  0x2d   : > { %s804_s8 = smov 256   ;;  %s805_s15 = smov 16  }
  0x2e   : > { %588 = dma.hbm_to_vmem [thread:$0]  (!%p901_p5), %s1105_s1, 2048, %s893_s24, [#allocation6], %s804_s8, %s804_s8, %s805_s15  }
  0x2f   : > { %p32_p10 = scmp.ge.s32.totalorder %s31_s27, 2  ;;  %s49_s23 = sadd.s32 1, %s789_s11 }
  0x30   : > { %s162_s28 = sand.u32 1, %s789_s11   ;;  %s575_s3 = sshll.u32 %s797_s13, 7 }
  0x31   : > { %s1134_s27 = smov (%p32_p10, %s31_s27), 0  ;;  %s554_s29 = sshll.u32 %s162_s28, 4 }
  0x32   : > { %s42_s30 = ssub.s32 %s797_s13, %s1134_s27  ;;  %s945_s5 = scalar_lea.hbm %s1104_s0, %s575_s3 }
  0x33   : > { %p47_p3 = scmp.eq.s32.totalorder %s42_s30, 0  ;;  %s166_s24 = scalar_lea.vmem [#allocation2], %s554_s29 }
  0x34   : > { %s177_s6 = sshll.u32 %s166_s24, 4  ;;  %s952_s15 = scalar_lea.sflag [#allocation3], %s162_s28  ;;  %s950_s6 = int_to_ptr.vmem [resolvable:$true] %s177_s6 }
  0x35   : > { %s948_s7 = scalar_select %p47_p3, %s789_s11, %s49_s23  }
  0x36   : > { %s685_s16 = scalar_lea.hbm %s945_s5, 256  ;;  %p1121_p8 = scmp.ne.s32.totalorder %s1120_s26, 0 }
  0x37   : > { %p686_p6 = scmp.ne.s32.totalorder %s945_s5, %s685_s16  ;;  %s690_s3 = scalar_lea.hbm %s1104_s0, 512 }
  0x38   : > { %p687_p12 = pneg %p1121_p8  ;;  %p691_p2 = scmp.lt.u32.totalorder %s945_s5, %s1104_s0 }
  0x39   : > { %p692_p7 = scmp.lt.u32.totalorder %s690_s3, %s685_s16  ;;  %p694_p11 = scmp.lt.u32.totalorder %s685_s16, %s945_s5 }
  0x3a   : > { %p688_p0 = pnand %p687_p12, %p686_p6 }
  0x3b   : > { %p693_p9 = por %p692_p7, %p691_p2 }
  0x3c   : > { %p689_p5 = pneg %p688_p0 }
  0x3d   : > { %p695_p13 = por %p694_p11, %p693_p9 }
  0x3f   : > { %p696_p4 = pnand %p695_p13, %p689_p5 }
  0x41   : > { %699 = shalt.err (!%p696_p4)
}
  0x42   : > { %s700_s23 = scalar_lea.vmem %s950_s6, 256  ;;  %s806_s28 = smov [#allocation2]  }
  0x43   : > { %p701_p1 = scmp.ne.s32.totalorder %s950_s6, %s700_s23  ;;  %s705_s25 = sshll.u32 %s806_s28, 4  ;;  %s706_s25 = int_to_ptr.vmem [resolvable:$false] %s705_s25 }
  0x44   : > { %s707_s24 = scalar_lea.vmem %s706_s25, 512  ;;  %p708_p6 = scmp.lt.s32.totalorder %s950_s6, %s706_s25 }
  0x45   : > { %p703_p10 = pnand %p701_p1, %p687_p12  ;;  %p709_p0 = scmp.lt.s32.totalorder %s707_s24, %s700_s23 }
  0x47   : > { %p704_p3 = pneg %p703_p10  ;;  %p710_p2 = por %p709_p0, %p708_p6 }
  0x49   : > { %p711_p7 = pnand %p710_p2, %p704_p3 }
  0x4b   : > { %714 = shalt.err (!%p711_p7)
}
  0x4c   : > { %s807_s16 = smov 128   ;;  %s808_s18 = smov 8  }
  0x4d   : > { %592 = dma.hbm_to_vmem [thread:$0]  (!%p1121_p8), %s945_s5, 256, %s950_s6, %s952_s15, %s804_s8, %s807_s16, %s808_s18  }
  0x4e   : > { %p1122_p12 = scmp.ne.s32.totalorder %s1118_s22, 0 }
  0x4f   : > { %s984_s30 = sand.u32 (!%p1122_p12), 1, %s785_s10   ;;  %p1123_p5 = scmp.ne.s32.totalorder (!%p1122_p12), %s1115_s19, 0 }
  0x50   : > { %189 = sbr.rel (%p1122_p12) target bundleno = 137 (0x89), region = 28  ;;  %s558_s3 = sshll.u32 (!%p1122_p12), %s984_s30, 4 }
  0x51   : > { %s192_s29 = scalar_lea.sflag (!%p1122_p12), [#allocation3], %s984_s30  ;;  %s988_s4 = scalar_lea.vmem (!%p1122_p12), [#allocation2], %s558_s3 }
  0x57   : > { %768 = dma.done.wait (%p1123_p5), %s192_s29, 256  }
  0x58   : > { %770 = vsyncadd (%p1123_p5), %s192_s29, 4294967040  ;;  %p1124_p8 = scmp.ne.s32.totalorder %s1113_s17, 0 }
  0x5a   : > { %772 = dma.done.wait (%p1124_p8), [#allocation6], 2048  }
  0x5b   : > { %774 = vsyncadd (%p1124_p8), [#allocation6], 4294965248  ;;  %v225_v0 = vlaneseq  ;;  %v223_v4 = vld [vmem:[%s988_s4] ss:$4 sm:$0x3]  ;;  %v249_v42 = vld [vmem:[#allocation5 + $0x8] sm:$0xff] }
  0x5c   : > { %v561_v5 = vld [vmem:[%s988_s4 + $0x8] ss:$4 sm:$0x3]  ;;  %v1004_v8 = vld [vmem:[#allocation5] sm:$0xff]  ;;  %v296_v16 = vld [vmem:[#allocation5 + $0x10] sm:$0xff]  ;;  %vm414_vm0 = vcmask 424960  }
  0x5d   : > { %v226_v1 = vshrl.u32 %v225_v0, 7  ;;  %v1006_v9 = vld [vmem:[#allocation5 + $0x40] sm:$0xff]  ;;  %v563_v15 = vld [vmem:[%s988_s4 + $0x9] ss:$4 sm:$0x3]  ;;  %v299_v17 = vld [vmem:[#allocation5 + $0x50] sm:$0xff] }
  0x5e   : > { %v562_v10 = vld [vmem:[%s988_s4 + $0x1] ss:$4 sm:$0x3]  ;;  %v564_v22 = vld [vmem:[%s988_s4 + $0x2] ss:$4 sm:$0x3] }
  0x5f   : > { %v227_v2 = vsub.s32 0, %v226_v1  ;;  %v231_v3 = vsub.s32 1, %v226_v1  ;;  %v565_v23 = vld [vmem:[%s988_s4 + $0xa] ss:$4 sm:$0x3]  ;;  %v344_v28 = vld [vmem:[#allocation5 + $0x20] sm:$0xff] }
  0x60   : > { %v347_v29 = vld [vmem:[#allocation5 + $0x60] sm:$0xff]  ;;  %v567_v35 = vld [vmem:[%s988_s4 + $0xb] ss:$4 sm:$0x3]  ;;  %v392_v36 = vld [vmem:[#allocation5 + $0x30] sm:$0xff]  ;;  %s560_s17 = sshll.u32 %s984_s30, 5 }
  0x61   : > { %v1000_v6 = vrot.slane %v223_v4, %v227_v2  ;;  %v1002_v7 = vrot.slane %v561_v5, %v227_v2  ;;  %v1009_v11 = vrot.slane %v223_v4, %v231_v3  ;;  %v1011_v12 = vrot.slane %v561_v5, %v231_v3  ;;  %v566_v30 = vld [vmem:[%s988_s4 + $0x3] ss:$4 sm:$0x3]  ;;  %v252_v43 = vld [vmem:[#allocation5 + $0x48] sm:$0xff]  ;;  %v297_v44 = vld [vmem:[#allocation5 + $0x18] sm:$0xff]  ;;  %s219_s19 = scalar_lea.vmem [#allocation7], %s560_s17 }
  0x62   : > { %v275_v13 = vrot.slane %v562_v10, %v227_v2  ;;  %v1013_v14 = vrot.slane %v562_v10, %v231_v3  ;;  %v288_v20 = vrot.slane %v563_v15, %v227_v2  ;;  %v1020_v21 = vrot.slane %v563_v15, %v231_v3  ;;  %v395_v37 = vld [vmem:[#allocation5 + $0x70] sm:$0xff]  ;;  %v300_v49 = vld [vmem:[#allocation5 + $0x58] sm:$0xff]  ;;  %v345_v50 = vld [vmem:[#allocation5 + $0x28] sm:$0xff]  ;;  %s576_s22 = sshll.u32 %s793_s12, 8  ;;  %s437_s26 = sshll.u32 %s219_s19, 4  ;;  %s1054_s26 = int_to_ptr.vmem [resolvable:$true] %s437_s26 }
  0x63   : > { %v253_v18 = vmul.f32 %v1004_v8, %v1000_v6  ;;  %v255_v19 = vmul.f32 %v1006_v9, %v1002_v7  ;;  %v323_v25 = vrot.slane %v564_v22, %v227_v2  ;;  %v1024_v26 = vrot.slane %v564_v22, %v231_v3  ;;  %v348_v51 = vld [vmem:[#allocation5 + $0x68] sm:$0xff]  ;;  %v393_v56 = vld [vmem:[#allocation5 + $0x38] sm:$0xff]  ;;  %s1052_s6 = scalar_lea.hbm %s1106_s2, %s576_s22  ;;  %s420_s12 = scalar_lea.sflag [#allocation4], %s984_s30 }
  0x64   : > { %v301_v24 = vmul.f32 %v296_v16, %v275_v13  ;;  %v336_v27 = vrot.slane %v565_v23, %v227_v2  ;;  %v303_v32 = vmul.f32 %v299_v17, %v288_v20  ;;  %v1027_v33 = vrot.slane %v565_v23, %v231_v3  ;;  %v396_v57 = vld [vmem:[#allocation5 + $0x78] sm:$0xff]  ;;  %s715_s15 = scalar_lea.vmem %s1054_s26, 512  ;;  %p1125_p11 = scmp.ne.s32.totalorder %s1116_s20, 0 }
  0x65   : > { %v257_v31 = vadd.f32 %v255_v19, %v253_v18  ;;  %v371_v34 = vrot.slane %v566_v30, %v227_v2  ;;  %v349_v38 = vmul.f32 %v344_v28, %v323_v25  ;;  %v375_v40 = vrot.slane %v566_v30, %v231_v3  ;;  %p716_p9 = scmp.ne.s32.totalorder %s1054_s26, %s715_s15  ;;  %s809_s23 = smov [#allocation7]  }
  0x66   : > { %v351_v39 = vmul.f32 %v347_v29, %v336_v27  ;;  %v384_v41 = vrot.slane %v567_v35, %v227_v2  ;;  %v305_v45 = vadd.f32 %v303_v32, %v301_v24  ;;  %v388_v46 = vrot.slane %v567_v35, %v231_v3  ;;  %s719_s28 = sshll.u32 %s809_s23, 4  ;;  %s720_s28 = int_to_ptr.vmem [resolvable:$false] %s719_s28 }
  0x67   : > { %v397_v47 = vmul.f32 %v392_v36, %v371_v34  ;;  %v254_v48 = vmul.f32 %v249_v42, %v1009_v11  ;;  %v256_v54 = vmul.f32 %v252_v43, %v1011_v12  ;;  %v302_v55 = vmul.f32 %v297_v44, %v1013_v14  ;;  %p717_p13 = pnand %p716_p9, %p1125_p11  ;;  %s721_s25 = scalar_lea.vmem %s720_s28, 1024 }
  0x68   : > { %v353_v52 = vadd.f32 %v351_v39, %v349_v38  ;;  %v399_v53 = vmul.f32 %v395_v37, %v384_v41  ;;  %v307_v58 = vadd.f32 %v305_v45, %v257_v31  ;;  %v304_v59 = vmul.f32 %v300_v49, %v1020_v21  ;;  %p722_p1 = scmp.lt.s32.totalorder %s1054_s26, %s720_s28  ;;  %p723_p10 = scmp.lt.s32.totalorder %s721_s25, %s715_s15 }
  0x69   : > { %v350_v60 = vmul.f32 %v345_v50, %v1024_v26  ;;  %v352_v61 = vmul.f32 %v348_v51, %v1027_v33  ;;  %v258_v63 = vadd.f32 %v256_v54, %v254_v48  ;;  %v398_v0 = vmul.f32 %v393_v56, %v375_v40  ;;  %p718_p4 = pneg %p717_p13 }
  0x6a   : > { %v401_v62 = vadd.f32 %v399_v53, %v397_v47  ;;  %v400_v1 = vmul.f32 %v396_v57, %v388_v46  ;;  %v355_v2 = vadd.f32 %v353_v52, %v307_v58  ;;  %v306_v3 = vadd.f32 %v304_v59, %v302_v55  ;;  %p724_p3 = por %p723_p10, %p722_p1 }
  0x6b   : > { %v354_v4 = vadd.f32 %v352_v61, %v350_v60  ;;  %v261_v5 = vmul.f32 %v1004_v8, %v1002_v7  ;;  %v263_v15 = vmul.f32 %v1006_v9, %v1000_v6  ;;  %v309_v18 = vmul.f32 %v296_v16, %v288_v20 }
  0x6c   : > { %v402_v10 = vadd.f32 %v400_v1, %v398_v0  ;;  %v311_v19 = vmul.f32 %v299_v17, %v275_v13  ;;  %v403_v22 = vadd.f32 %v401_v62, %v355_v2  ;;  %v308_v23 = vadd.f32 %v306_v3, %v258_v63  ;;  %p725_p6 = pnand %p724_p3, %p718_p4 }
  0x6d   : > { %v357_v24 = vmul.f32 %v344_v28, %v336_v27  ;;  %v359_v30 = vmul.f32 %v347_v29, %v323_v25  ;;  %v265_v31 = vsub.f32 %v261_v5, %v263_v15  ;;  %v405_v35 = vmul.f32 %v392_v36, %v384_v41 }
  0x6e   : > { %v313_v32 = vsub.f32 %v309_v18, %v311_v19  ;;  %v407_v38 = vmul.f32 %v395_v37, %v371_v34  ;;  %413 = vst [vmem:[%s219_s19] sm:$0xff] %v403_v22  ;;  %v356_v39 = vadd.f32 %v354_v4, %v308_v23  ;;  %v262_v7 = vmul.f32 %v249_v42, %v1011_v12 }
  0x6f   : > { %v361_v45 = vsub.f32 %v357_v24, %v359_v30  ;;  %v264_v8 = vmul.f32 %v252_v43, %v1009_v11  ;;  %v310_v13 = vmul.f32 %v297_v44, %v1020_v21  ;;  %v312_v16 = vmul.f32 %v300_v49, %v1013_v14 }
  0x70   : > { %v315_v6 = vadd.f32 %v313_v32, %v265_v31  ;;  %v409_v9 = vsub.f32 %v405_v35, %v407_v38  ;;  %v404_v17 = vadd.f32 %v402_v10, %v356_v39  ;;  %v358_v25 = vmul.f32 %v345_v50, %v1027_v33 }
  0x71   : > { %v266_v20 = vsub.f32 %v262_v7, %v264_v8  ;;  %v360_v27 = vmul.f32 %v348_v51, %v1024_v26  ;;  %v314_v29 = vsub.f32 %v310_v13, %v312_v16  ;;  %v406_v34 = vmul.f32 %v393_v56, %v388_v46 }
  0x72   : > { %v363_v28 = vadd.f32 %v361_v45, %v315_v6  ;;  %v408_v12 = vmul.f32 %v396_v57, %v375_v40  ;;  %415 = vst.msk [vmem:[%s219_s19 + $0x8] sm:$0xff] %vm414_vm0, %v404_v17 }
  0x73   : > { %v362_v11 = vsub.f32 %v358_v25, %v360_v27  ;;  %v316_v36 = vadd.f32 %v314_v29, %v266_v20 }
  0x74   : > { %v411_v21 = vadd.f32 %v409_v9, %v363_v28  ;;  %v410_v14 = vsub.f32 %v406_v34, %v408_v12 }
  0x75   : > { %v364_v37 = vadd.f32 %v362_v11, %v316_v36 }
  0x76   : > { %568 = vst [vmem:[%s219_s19 + $0x10] sm:$0xff] %v411_v21 }
  0x77   : > { %v412_v26 = vadd.f32 %v410_v14, %v364_v37 }
  0x79   : > { %569 = vst.msk [vmem:[%s219_s19 + $0x18] sm:$0xff] %vm414_vm0, %v412_v26 }
  0x7a   : > { %728 = shalt.err (!%p725_p6)
}
  0x7b   : > { %s729_s24 = scalar_lea.hbm %s1052_s6, 512  ;;  %s733_s3 = scalar_lea.hbm %s1106_s2, 1024 }
  0x7c   : > { %p730_p0 = scmp.ne.s32.totalorder %s1052_s6, %s729_s24  ;;  %p734_p12 = scmp.lt.u32.totalorder %s1052_s6, %s1106_s2 }
  0x7d   : > { %p735_p5 = scmp.lt.u32.totalorder %s733_s3, %s729_s24  ;;  %p737_p9 = scmp.lt.u32.totalorder %s729_s24, %s1052_s6 }
  0x7e   : > { %p731_p2 = pnand %p730_p0, %p1125_p11 }
  0x7f   : > { %p736_p8 = por %p735_p5, %p734_p12 }
  0x80   : > { %p732_p7 = pneg %p731_p2 }
  0x81   : > { %p738_p13 = por %p737_p9, %p736_p8 }
  0x83   : > { %p739_p4 = pnand %p738_p13, %p732_p7 }
  0x85   : > { %742 = shalt.err (!%p739_p4)
}
  0x86   : > { %s810_s17 = smov 256   ;;  %s811_s19 = smov 512  }
  0x87   : > { %s812_s22 = smov 16  }
  0x88   : > { %583 = dma.vmem_to_hbm [thread:$0]  (%p1125_p11), %s1054_s26, 512, %s1052_s6, %s420_s12, %s810_s17, %s811_s19, %s812_s22  }
  0x89 PF: > { %s452_s8 = sand.u32 1, %s781_s9   ;;  %p1126_p1 = scmp.ne.s32.totalorder %s1117_s21, 0 }
  0x8a   : > { %p1127_p10 = scmp.ge.s32.totalorder %s801_s14, 2  ;;  %s453_s5 = scalar_lea.sflag [#allocation4], %s452_s8 }
  0x8c   : > { %p594_p3 = pnand %p1127_p10, %p1126_p1 }
  0x8e   : > { %776 = dma.done.wait (!%p594_p3), %s453_s5, 512  }
  0x8f   : > { %778 = vsyncadd (!%p594_p3), %s453_s5, 4294966784  ;;  %s19_s14 = sadd.s32 1, %s801_s14   ;;  %s1128_s9 = smov %s785_s10 }
  0x90   : > { %p16_p6 = scmp.ge.s32.totalorder %s19_s14, 4   ;;  %s1129_s10 = smov %s789_s11 }
  0x91   : > { %s1130_s11 = smov %s948_s7  ;;  %s1131_s12 = smov %s797_s13 }
  0x92   : > { %s1132_s13 = smov %s1134_s27  ;;  %18 = sbr.rel (!%p16_p6) target bundleno = 7 (0x7), region = 93 }
  0x99   :  { %458 = vsyncpa [#allocation3], 1 }
  0x9a   :  { %460 = vsyncpa [#allocation3 + $0x1], 1 }
  0x9b   :  { %461 = vsyncpa [#allocation6], 1 }
  0x9c   :  { %462 = vsyncpa [#allocation4], 1 }
  0x9d   :  { %464 = vsyncpa [#allocation4 + $0x1], 1 }

</bundles_post_ra>
